<compile_context>
chip_gen: v7x
topology: tpu7x:2x2x1
jax: 0.10.0
libtpu: 0.0.40
codegen_flags: <defaults>
</compile_context>

<pallas_src>
import functools

import jax
import jax.numpy as jnp
from jax.experimental import pallas as pl
from jax.experimental.pallas import tpu as pltpu


def _round_up(v, m):
    return (v + m - 1) // m * m


def _motion_estimator_kernel(tp_ref, x_ref, w1tp_ref, w1x_ref, b1_ref,
                             w2_ref, b2_ref, out_ref):
    """Fused MLP for one row tile.

    tp_ref  : (TM, 2)     target points (f32)
    x_ref   : (TM, 64)    features (f32 or bf16)
    w1tp_ref: (2, H)      fc weight rows for the target-point columns (f32)
    w1x_ref : (64, H)     fc weight rows for the x columns (transposed vs torch)
    b1_ref  : (1, H)      fc bias (f32)
    w2_ref  : (H, C)      fc2 weight (C = 2*T, e.g. 8)
    b2_ref  : (1, C)      fc2 bias (f32)
    out_ref : (TM, C)     output tile (f32)
    """
    # fc: main 64-wide contraction on the MXU, f32 accumulation.
    h = jnp.dot(x_ref[...], w1x_ref[...], preferred_element_type=jnp.float32)

    # target-point (2-wide) contribution on the VPU: two broadcast FMAs.
    tp = tp_ref[...].astype(jnp.float32)            # (TM, 2)
    w1tp = w1tp_ref[...].astype(jnp.float32)        # (2, H)
    h = h + tp[:, 0:1] * w1tp[0:1, :] + tp[:, 1:2] * w1tp[1:2, :]
    h = h + b1_ref[...].astype(jnp.float32)

    # F.layer_norm over last dim (biased variance, eps=1e-5, no affine) + relu.
    mean = jnp.mean(h, axis=-1, keepdims=True)
    var = jnp.mean((h - mean) * (h - mean), axis=-1, keepdims=True)
    hr = jnp.maximum((h - mean) * jax.lax.rsqrt(var + 1e-5), 0.0)

    # fc2 (MXU, f32 accumulation), real (narrow) output width.
    out = jnp.dot(hr.astype(w2_ref.dtype), w2_ref[...],
                  preferred_element_type=jnp.float32)
    out_ref[...] = (out + b2_ref[...].astype(jnp.float32)).astype(out_ref.dtype)


def _mlp_pallas(tp, x, w1_tp, w1_x, b1, w2, b2, *, max_tile_m=1024):
    """Runs the fused MLP on N rows, tiled over N. Returns (N, C) f32."""
    n, d_x = x.shape
    d_tp = tp.shape[1]
    h = w1_x.shape[1]
    c_out = w2.shape[1]

    # Big row tile (multiple of 8); Pallas handles the ragged last block.
    tile_m = min(_round_up(max_tile_m, 8), _round_up(max(n, 8), 8))
    grid = (pl.cdiv(n, tile_m),)

    # Matmul path runs in the weight storage dtype (f32 or bf16); tp stays f32.
    x = x.astype(w1_x.dtype)
    tp = tp.astype(jnp.float32)

    itm = jnp.dtype(w1_x.dtype).itemsize
    flops = 2 * n * (d_x * h + h * c_out) + 8 * n * h
    bytes_accessed = (n * (d_tp * 4 + d_x * itm)              # activations in
                      + n * c_out * 4                         # output
                      + (d_tp * h + h) * 4 + d_x * h * itm    # fc params
                      + h * c_out * itm + c_out * 4)          # fc2 params

    return pl.pallas_call(
        _motion_estimator_kernel,
        out_shape=jax.ShapeDtypeStruct((n, c_out), jnp.float32),
        grid_spec=pltpu.PrefetchScalarGridSpec(
            num_scalar_prefetch=0,
            grid=grid,
            in_specs=[
                pl.BlockSpec((tile_m, d_tp), lambda i: (i, 0)),   # target_point
                pl.BlockSpec((tile_m, d_x), lambda i: (i, 0)),    # x
                pl.BlockSpec((d_tp, h), lambda i: (0, 0)),        # w1_tp
                pl.BlockSpec((d_x, h), lambda i: (0, 0)),         # w1_x
                pl.BlockSpec((1, h), lambda i: (0, 0)),           # b1
                pl.BlockSpec((h, c_out), lambda i: (0, 0)),       # w2
                pl.BlockSpec((1, c_out), lambda i: (0, 0)),       # b2
            ],
            out_specs=pl.BlockSpec((tile_m, c_out), lambda i: (i, 0)),
        ),
        compiler_params=pltpu.CompilerParams(
            dimension_semantics=("parallel",)),
        cost_estimate=pl.CostEstimate(
            flops=flops, transcendentals=n, bytes_accessed=bytes_accessed),
    )(tp, x, w1_tp, w1_x, b1, w2, b2)


def motion_estimator_forward(params, target_point, x, *, max_tile_m=1024):
    """JAX/Pallas equivalent of Motion_Estimator.forward.

    target_point: (num, 2) or (bs, num, 2)
    x           : (num, 64) or (bs, num, 64)
    returns     : (num, T, 2) or (bs, num, T, 2)
    """
    if target_point.ndim == 2:
        flat = _mlp_pallas(target_point, x, params["w1_tp"], params["w1_x"],
                           params["b1"], params["w2"], params["b2"],
                           max_tile_m=max_tile_m)
        return flat.reshape(x.shape[0], -1, 2)
    elif target_point.ndim == 3:
        bs, num = x.shape[0], x.shape[1]
        flat = _mlp_pallas(target_point.reshape(bs * num, -1),
                           x.reshape(bs * num, -1),
                           params["w1_tp"], params["w1_x"],
                           params["b1"], params["w2"], params["b2"],
                           max_tile_m=max_tile_m)
        return flat.reshape(bs, num, -1, 2)
    else:
        raise ValueError('the Motion Estimator size is wrong')


def init_params(key, input_channels=66, hidden_channels=64, output_channels=8,
                matmul_dtype=jnp.float32):
    """nn.Linear-style init, stored split/transposed for the kernel.

    Set matmul_dtype=jnp.bfloat16 on v6e/v7x to halve activation/weight HBM
    traffic (LayerNorm and accumulation stay f32 inside the kernel).
    """
    assert output_channels % 2 == 0, "forward reshapes to (..., T, 2)"
    k1, k2, k3, k4 = jax.random.split(key, 4)
    bound1 = 1.0 / float(input_channels) ** 0.5
    bound2 = 1.0 / float(hidden_channels) ** 0.5
    # stored transposed vs torch: (in, out)
    w1 = jax.random.uniform(k1, (input_channels, hidden_channels),
                            jnp.float32, -bound1, bound1)
    b1 = jax.random.uniform(k2, (1, hidden_channels), jnp.float32,
                            -bound1, bound1)
    w2 = jax.random.uniform(k3, (hidden_channels, output_channels),
                            jnp.float32, -bound2, bound2)
    b2 = jax.random.uniform(k4, (1, output_channels), jnp.float32,
                            -bound2, bound2)
    return dict(
        w1_tp=w1[:2],                           # (2, H), stays f32 (VPU path)
        w1_x=w1[2:].astype(matmul_dtype),       # (64, H)
        b1=b1,                                  # (1, H) f32
        w2=w2.astype(matmul_dtype),             # (H, C) — no lane padding
        b2=b2,                                  # (1, C) f32
    )


def _reference_forward(params, target_point, x):
    """Pure-JAX (f32) reference of the same forward pass."""
    w1 = jnp.concatenate(
        [params["w1_tp"].astype(jnp.float32),
         params["w1_x"].astype(jnp.float32)], axis=0)
    inp = jnp.concatenate([target_point, x], axis=-1)
    h = inp @ w1 + params["b1"].astype(jnp.float32)
    mean = jnp.mean(h, axis=-1, keepdims=True)
    var = jnp.mean((h - mean) ** 2, axis=-1, keepdims=True)
    h = jnp.maximum((h - mean) * jax.lax.rsqrt(var + 1e-5), 0.0)
    out = h @ params["w2"].astype(jnp.float32) + params["b2"].astype(jnp.float32)
    return out.reshape(x.shape[:-1] + (-1, 2))


# TODO(synk): Motion_Estimator._loss (SmoothL1 over per-step offsets) is
# training-only and not part of forward(); not implemented as a kernel.


if __name__ == "__main__":
    NUM = 16          # number of agents / rows
    T = 4             # predicted timesteps -> output_channels = 2*T = 8
    IN_CH, HID_CH, OUT_CH = 66, 64, 2 * T

    params = init_params(jax.random.PRNGKey(42), IN_CH, HID_CH, OUT_CH)

    key = jax.random.PRNGKey(0)
    k_tp, k_x, k_tp3, k_x3, k_tpr, k_xr = jax.random.split(key, 6)

    fwd = jax.jit(functools.partial(motion_estimator_forward, params))

    # --- 2D path: (num, 2), (num, 64) -> (num, T, 2) ---
    target_point = jax.random.normal(k_tp, (NUM, 2), jnp.float32)
    x = jax.random.normal(k_x, (NUM, 64), jnp.float32)
    out = jax.block_until_ready(fwd(target_point, x))
    assert out.shape == (NUM, T, 2), out.shape
    ref = _reference_forward(params, target_point, x)
    assert jnp.allclose(out, ref, atol=1e-4, rtol=1e-4), \
        float(jnp.max(jnp.abs(out - ref)))

    # --- 3D path: (bs, num, 2), (bs, num, 64) -> (bs, num, T, 2) ---
    BS = 2
    tp3 = jax.random.normal(k_tp3, (BS, NUM, 2), jnp.float32)
    x3 = jax.random.normal(k_x3, (BS, NUM, 64), jnp.float32)
    out3 = jax.block_until_ready(fwd(tp3, x3))
    assert out3.shape == (BS, NUM, T, 2), out3.shape
    ref3 = _reference_forward(params, tp3, x3)
    assert jnp.allclose(out3, ref3, atol=1e-4, rtol=1e-4), \
        float(jnp.max(jnp.abs(out3 - ref3)))

    # --- ragged grid: N not a multiple of the row tile (Pallas masks edges) ---
    NR = 200
    tpr = jax.random.normal(k_tpr, (NR, 2), jnp.float32)
    xr = jax.random.normal(k_xr, (NR, 64), jnp.float32)
    fwd_ragged = jax.jit(functools.partial(motion_estimator_forward, params,
                                           max_tile_m=64))   # grid = 4 steps
    outr = jax.block_until_ready(fwd_ragged(tpr, xr))
    assert outr.shape == (NR, T, 2), outr.shape
    refr = _reference_forward(params, tpr, xr)
    assert jnp.allclose(outr, refr, atol=1e-4, rtol=1e-4), \
        float(jnp.max(jnp.abs(outr - refr)))

    # --- bf16 storage path (recommended on v6e/v7x), f32 accumulate inside ---
    params_bf16 = init_params(jax.random.PRNGKey(42), IN_CH, HID_CH, OUT_CH,
                              matmul_dtype=jnp.bfloat16)
    fwd_bf16 = jax.jit(functools.partial(motion_estimator_forward, params_bf16))
    out_b = jax.block_until_ready(fwd_bf16(tpr, xr))
    assert out_b.shape == (NR, T, 2), out_b.shape
    assert jnp.allclose(out_b, refr, atol=2.5e-2, rtol=2.5e-2), \
        float(jnp.max(jnp.abs(out_b - refr)))

    print("KERNEL_OK")
</pallas_src>

<mosaic_0001>
module attributes {stable_mosaic.version = 11 : i64} {
  func.func @_motion_estimator_kernel(%arg0: i32, %arg1: memref<16x2xf32, #tpu.memory_space<vmem>>, %arg2: memref<16x64xf32, #tpu.memory_space<vmem>>, %arg3: memref<2x64xf32, #tpu.memory_space<vmem>>, %arg4: memref<64x64xf32, #tpu.memory_space<vmem>>, %arg5: memref<1x64xf32, #tpu.memory_space<vmem>>, %arg6: memref<64x8xf32, #tpu.memory_space<vmem>>, %arg7: memref<1x8xf32, #tpu.memory_space<vmem>>, %arg8: memref<16x8xf32, #tpu.memory_space<vmem>>) attributes {dimension_semantics = [#tpu.dimension_semantics<parallel>], iteration_bounds = array<i64: 1>, scalar_prefetch = 0 : i64, scratch_operands = 0 : i64, tpu.core_type = #tpu.core_type<tc>, window_params = [{transform_indices = @transform_0, window_bounds = array<i64: 16, 2>}, {transform_indices = @transform_1, window_bounds = array<i64: 16, 64>}, {pipeline_mode = #tpu.pipeline_mode<synchronous>, transform_indices = @transform_2, window_bounds = array<i64: 2, 64>}, {pipeline_mode = #tpu.pipeline_mode<synchronous>, transform_indices = @transform_3, window_bounds = array<i64: 64, 64>}, {pipeline_mode = #tpu.pipeline_mode<synchronous>, transform_indices = @transform_4, window_bounds = array<i64: 1, 64>}, {pipeline_mode = #tpu.pipeline_mode<synchronous>, transform_indices = @transform_5, window_bounds = array<i64: 64, 8>}, {pipeline_mode = #tpu.pipeline_mode<synchronous>, transform_indices = @transform_6, window_bounds = array<i64: 1, 8>}, {transform_indices = @transform_7, window_bounds = array<i64: 16, 8>}]} {
    %c0 = arith.constant 0 : index
    %c0_0 = arith.constant 0 : index
    %0 = vector.load %arg2[%c0, %c0_0] : memref<16x64xf32, #tpu.memory_space<vmem>>, vector<16x64xf32>
    %c0_1 = arith.constant 0 : index
    %c0_2 = arith.constant 0 : index
    %1 = vector.load %arg4[%c0_1, %c0_2] : memref<64x64xf32, #tpu.memory_space<vmem>>, vector<64x64xf32>
    %cst = arith.constant dense<0.000000e+00> : vector<16x64xf32>
    %2 = tpu.matmul %0, %1, %cst {dimension_numbers = #tpu.dot_dimension_numbers<[1], [0], [0], [1], [0, 0, 1, 1], [], []>} : vector<16x64xf32>, vector<64x64xf32>, vector<16x64xf32> -> vector<16x64xf32>
    %c0_3 = arith.constant 0 : index
    %c0_4 = arith.constant 0 : index
    %3 = vector.load %arg1[%c0_3, %c0_4] : memref<16x2xf32, #tpu.memory_space<vmem>>, vector<16x2xf32>
    %c0_5 = arith.constant 0 : index
    %c0_6 = arith.constant 0 : index
    %4 = vector.load %arg3[%c0_5, %c0_6] : memref<2x64xf32, #tpu.memory_space<vmem>>, vector<2x64xf32>
    %5 = vector.extract_strided_slice %3 {offsets = [0, 0], sizes = [16, 1], strides = [1, 1]} : vector<16x2xf32> to vector<16x1xf32>
    %6 = vector.extract_strided_slice %4 {offsets = [0, 0], sizes = [1, 64], strides = [1, 1]} : vector<2x64xf32> to vector<1x64xf32>
    %7 = vector.broadcast %5 : vector<16x1xf32> to vector<16x64xf32>
    %8 = vector.broadcast %6 : vector<1x64xf32> to vector<16x64xf32>
    %9 = arith.mulf %7, %8 : vector<16x64xf32>
    %10 = arith.addf %2, %9 : vector<16x64xf32>
    %11 = vector.extract_strided_slice %3 {offsets = [0, 1], sizes = [16, 1], strides = [1, 1]} : vector<16x2xf32> to vector<16x1xf32>
    %12 = vector.extract_strided_slice %4 {offsets = [1, 0], sizes = [1, 64], strides = [1, 1]} : vector<2x64xf32> to vector<1x64xf32>
    %13 = vector.broadcast %11 : vector<16x1xf32> to vector<16x64xf32>
    %14 = vector.broadcast %12 : vector<1x64xf32> to vector<16x64xf32>
    %15 = arith.mulf %13, %14 : vector<16x64xf32>
    %16 = arith.addf %10, %15 : vector<16x64xf32>
    %c0_7 = arith.constant 0 : index
    %c0_8 = arith.constant 0 : index
    %17 = vector.load %arg5[%c0_7, %c0_8] : memref<1x64xf32, #tpu.memory_space<vmem>>, vector<1x64xf32>
    %18 = vector.broadcast %17 : vector<1x64xf32> to vector<16x64xf32>
    %19 = arith.addf %16, %18 : vector<16x64xf32>
    %cst_9 = arith.constant dense<0.000000e+00> : vector<16xf32>
    %20 = vector.multi_reduction <add>, %19, %cst_9 [1] : vector<16x64xf32> to vector<16xf32>
    %21 = vector.shape_cast %20 : vector<16xf32> to vector<16x1xf32>
    %cst_10 = arith.constant 6.400000e+01 : f32
    %22 = vector.broadcast %cst_10 : f32 to vector<16x1xf32>
    %23 = arith.divf %21, %22 : vector<16x1xf32>
    %24 = vector.broadcast %23 : vector<16x1xf32> to vector<16x64xf32>
    %25 = arith.subf %19, %24 : vector<16x64xf32>
    %26 = vector.broadcast %23 : vector<16x1xf32> to vector<16x64xf32>
    %27 = arith.subf %19, %26 : vector<16x64xf32>
    %28 = arith.mulf %25, %27 : vector<16x64xf32>
    %cst_11 = arith.constant dense<0.000000e+00> : vector<16xf32>
    %29 = vector.multi_reduction <add>, %28, %cst_11 [1] : vector<16x64xf32> to vector<16xf32>
    %30 = vector.shape_cast %29 : vector<16xf32> to vector<16x1xf32>
    %cst_12 = arith.constant 6.400000e+01 : f32
    %31 = vector.broadcast %cst_12 : f32 to vector<16x1xf32>
    %32 = arith.divf %30, %31 : vector<16x1xf32>
    %33 = vector.broadcast %23 : vector<16x1xf32> to vector<16x64xf32>
    %34 = arith.subf %19, %33 : vector<16x64xf32>
    %cst_13 = arith.constant 9.99999974E-6 : f32
    %35 = vector.broadcast %cst_13 : f32 to vector<16x1xf32>
    %36 = arith.addf %32, %35 : vector<16x1xf32>
    %37 = math.rsqrt %36 : vector<16x1xf32>
    %38 = vector.broadcast %37 : vector<16x1xf32> to vector<16x64xf32>
    %39 = arith.mulf %34, %38 : vector<16x64xf32>
    %cst_14 = arith.constant 0.000000e+00 : f32
    %40 = vector.broadcast %cst_14 : f32 to vector<16x64xf32>
    %41 = arith.maximumf %39, %40 : vector<16x64xf32>
    %c0_15 = arith.constant 0 : index
    %c0_16 = arith.constant 0 : index
    %42 = vector.load %arg6[%c0_15, %c0_16] : memref<64x8xf32, #tpu.memory_space<vmem>>, vector<64x8xf32>
    %cst_17 = arith.constant dense<0.000000e+00> : vector<16x8xf32>
    %43 = tpu.matmul %41, %42, %cst_17 {dimension_numbers = #tpu.dot_dimension_numbers<[1], [0], [0], [1], [0, 0, 1, 1], [], []>} : vector<16x64xf32>, vector<64x8xf32>, vector<16x8xf32> -> vector<16x8xf32>
    %c0_18 = arith.constant 0 : index
    %c0_19 = arith.constant 0 : index
    %44 = vector.load %arg7[%c0_18, %c0_19] : memref<1x8xf32, #tpu.memory_space<vmem>>, vector<1x8xf32>
    %45 = vector.broadcast %44 : vector<1x8xf32> to vector<16x8xf32>
    %46 = arith.addf %43, %45 : vector<16x8xf32>
    %c0_20 = arith.constant 0 : index
    %c0_21 = arith.constant 0 : index
    %47 = vector.load %arg8[%c0_20, %c0_21] : memref<16x8xf32, #tpu.memory_space<vmem>>, vector<16x8xf32>
    tpu.vector_store %arg8[%c0_20, %c0_21], %46 {strides = array<i32>} : memref<16x8xf32, #tpu.memory_space<vmem>>, vector<16x8xf32>,
    return
  }
  func.func @transform_0(%arg0: i32) -> (i32, i32) {
    %c0_i32 = arith.constant 0 : i32
    %c0_i32_0 = arith.constant 0 : i32
    return %arg0, %c0_i32 : i32, i32
  }
  func.func @transform_1(%arg0: i32) -> (i32, i32) {
    %c0_i32 = arith.constant 0 : i32
    %c0_i32_0 = arith.constant 0 : i32
    return %arg0, %c0_i32 : i32, i32
  }
  func.func @transform_2(%arg0: i32) -> (i32, i32) {
    %c0_i32 = arith.constant 0 : i32
    %c0_i32_0 = arith.constant 0 : i32
    %c0_i32_1 = arith.constant 0 : i32
    return %c0_i32, %c0_i32_0 : i32, i32
  }
  func.func @transform_3(%arg0: i32) -> (i32, i32) {
    %c0_i32 = arith.constant 0 : i32
    %c0_i32_0 = arith.constant 0 : i32
    %c0_i32_1 = arith.constant 0 : i32
    return %c0_i32, %c0_i32_0 : i32, i32
  }
  func.func @transform_4(%arg0: i32) -> (i32, i32) {
    %c0_i32 = arith.constant 0 : i32
    %c0_i32_0 = arith.constant 0 : i32
    %c0_i32_1 = arith.constant 0 : i32
    return %c0_i32, %c0_i32_0 : i32, i32
  }
  func.func @transform_5(%arg0: i32) -> (i32, i32) {
    %c0_i32 = arith.constant 0 : i32
    %c0_i32_0 = arith.constant 0 : i32
    %c0_i32_1 = arith.constant 0 : i32
    return %c0_i32, %c0_i32_0 : i32, i32
  }
  func.func @transform_6(%arg0: i32) -> (i32, i32) {
    %c0_i32 = arith.constant 0 : i32
    %c0_i32_0 = arith.constant 0 : i32
    %c0_i32_1 = arith.constant 0 : i32
    return %c0_i32, %c0_i32_0 : i32, i32
  }
  func.func @transform_7(%arg0: i32) -> (i32, i32) {
    %c0_i32 = arith.constant 0 : i32
    %c0_i32_0 = arith.constant 0 : i32
    return %arg0, %c0_i32 : i32, i32
  }
}

</mosaic_0001>

<bundles_post_ra>
// kernel: motion_estimator_forward.1
= control target key start
LH: loop header
LB: loop body
LE: loop exit
PB: predicated region body
PF: predicated region fallthrough
CT: control target
= control target key end

     0   :  { %12 = vsyncpa [#allocation3], 0  ;;  %s586_s0 = inlined_call_operand.vmem [shape: f32[16,2], index: 0, kind: input, shape index: {}]   ;;  %s587_s1 = inlined_call_operand.vmem [shape: f32[16,64], index: 1, kind: input, shape index: {}]   ;;  %s588_s2 = inlined_call_operand.vmem [shape: f32[2,64], index: 2, kind: input, shape index: {}]   ;;  %s589_s3 = inlined_call_operand.hbm [shape: f32[64,64], index: 3, kind: input, shape index: {}]   ;;  %s590_s4 = inlined_call_operand.vmem [shape: f32[1,64], index: 4, kind: input, shape index: {}]   ;;  %s591_s5 = inlined_call_operand.hbm [shape: f32[64,8], index: 5, kind: input, shape index: {}]   ;;  %s592_s6 = inlined_call_operand.vmem [shape: f32[1,8], index: 6, kind: input, shape index: {}]   ;;  %s593_s7 = inlined_call_operand.vmem [shape: f32[16,8], index: 7, kind: output, shape index: {}]  }
   0x1   :  { %13 = vsyncpa [#allocation5], 0  ;;  %s481_s24 = smov [#allocation2]   ;;  %s433_s28 = scalar_lea.hbm %s589_s3, 1024 }
   0x2   :  { %s25_s25 = sshll.u32 %s481_s24, 4  ;;  %p434_p0 = scmp.ne.s32.totalorder %s589_s3, %s433_s28  ;;  %s26_s25 = int_to_ptr.vmem [resolvable:$true] %s25_s25 }
   0x3   :  { %p437_p1 = scmp.lt.u32.totalorder %s433_s28, %s589_s3 }
   0x5   :  { %p439_p2 = pnand %p437_p1, %p434_p0 }
   0x7   :  { %442 = shalt.err (!%p439_p2)
}
   0x8   :  { %s443_s10 = scalar_lea.vmem %s26_s25, 1024  ;;  %p448_p4 = scmp.lt.s32.totalorder %s26_s25, %s26_s25 }
   0x9   :  { %p444_p3 = scmp.ne.s32.totalorder %s26_s25, %s443_s10  ;;  %p449_p5 = scmp.lt.s32.totalorder %s443_s10, %s443_s10 }
   0xb   :  { %p450_p6 = por %p449_p5, %p448_p4 }
   0xd   :  { %p451_p7 = pnand %p450_p6, %p444_p3 }
   0xf   :  { %454 = shalt.err (!%p451_p7)
}
  0x10   :  { %s482_s11 = smov 128   ;;  %s483_s12 = smov 8  }
  0x11   :  { %31 = dma.hbm_to_vmem [thread:$0]  %s589_s3, 1024, %s26_s25, [#allocation3], %s482_s11, %s482_s11, %s483_s12  }
  0x12   :  { %s484_s15 = smov [#allocation4]   ;;  %s455_s19 = scalar_lea.hbm %s591_s5, 1024 }
  0x13   :  { %s39_s16 = sshll.u32 %s484_s15, 4  ;;  %p456_p8 = scmp.ne.s32.totalorder %s591_s5, %s455_s19  ;;  %s40_s16 = int_to_ptr.vmem [resolvable:$true] %s39_s16 }
  0x14   :  { %p459_p9 = scmp.lt.u32.totalorder %s455_s19, %s591_s5 }
  0x16   :  { %p461_p10 = pnand %p459_p9, %p456_p8 }
  0x18   :  { %464 = shalt.err (!%p461_p10)
}
  0x19   :  { %s465_s24 = scalar_lea.vmem %s40_s16, 1024  ;;  %p470_p12 = scmp.lt.s32.totalorder %s40_s16, %s40_s16 }
  0x1a   :  { %p466_p11 = scmp.ne.s32.totalorder %s40_s16, %s465_s24  ;;  %p471_p13 = scmp.lt.s32.totalorder %s465_s24, %s465_s24 }
  0x1c   :  { %p472_p0 = por %p471_p13, %p470_p12 }
  0x1e   :  { %p473_p1 = pnand %p472_p0, %p466_p11 }
  0x20   :  { %476 = shalt.err (!%p473_p1)
}
  0x21   :  { %45 = dma.hbm_to_vmem [thread:$0]  %s591_s5, 1024, %s40_s16, [#allocation5], %s482_s11, %s482_s11, %s483_s12  }
  0x22   :  { %477 = dma.done.wait [#allocation3], 1024  }
  0x23   :  { %478 = vsyncadd [#allocation3], 4294966272 }
  0x24   :  { %479 = dma.done.wait [#allocation5], 1024  }
  0x25   :  { %480 = vsyncadd [#allocation5], 4294966272  ;;  %v485_v0 = vmov 0   ;;  %v486_v1 = vmov 1   ;;  %v56_v2 = vld [vmem:[#allocation2] sm:$0xff]  ;;  %v57_v3 = vld [vmem:[#allocation2 + $0x8] sm:$0xff]  ;;  %v77_v18 = vlaneseq }
  0x26   :  { %426 = vset.pattern.permute.xlu0 %v485_v0  ;;  %427 = vset.pattern.permute.xlu1 %v486_v1  ;;  %v58_v4 = vld [vmem:[#allocation2 + $0x10] sm:$0xff]  ;;  %vm83_vm0 = vcmask 523264   ;;  %v388_v5 = vpack.c.bf16 %v57_v3, %v56_v2  ;;  %v59_v6 = vld [vmem:[#allocation2 + $0x18] sm:$0xff]  ;;  %v60_v8 = vld [vmem:[#allocation2 + $0x20] sm:$0xff]  ;;  %vm315_vm1 = vcmask 64512  }
  0x27   :  { %v392_v7 = vpack.c.bf16 %v59_v6, %v58_v4  ;;  %v61_v9 = vld [vmem:[#allocation2 + $0x28] sm:$0xff]  ;;  %v54_v10 = vld [vmem:[%s587_s1] sm:$0xff]  ;;  %v65_v13 = vld [vmem:[%s586_s0 + $0x8] sm:$0xff]  ;;  %v78_v19 = vshrl.u32 %v77_v18, 7 }
  0x28   :  { %389 = vmatprep.subr.bf16.mxu0 %v388_v5  ;;  %366 = vmatprep.mubr.msk.f32.mxu0 %vm83_vm0, %v54_v10  ;;  %v64_v11 = vld [vmem:[%s586_s0] sm:$0xff]  ;;  %v396_v12 = vpack.c.bf16 %v61_v9, %v60_v8  ;;  %v63_v15 = vld [vmem:[#allocation2 + $0x38] sm:$0xff]  ;;  %v219_v54 = vld [vmem:[#allocation4] sm:$0xff] }
  0x29   :  { %391 = vmatpush3.bf16.msra.mxu0 %v388_v5  ;;  %69 = vperm.xlu0 %426, %v64_v11   ;;  %v62_v14 = vld [vmem:[#allocation2 + $0x30] sm:$0xff]  ;;  %v55_v17 = vld [vmem:[%s587_s1 + $0x8] sm:$0xff]  ;;  %v79_v21 = vsub.s32 0, %v78_v19  ;;  %v175_v24 = vsub.s32 1, %v78_v19  ;;  %v220_v55 = vld [vmem:[#allocation4 + $0x8] sm:$0xff] }
  0x2a   :  { %393 = vmatprep.subr.bf16.mxu0 %v392_v7  ;;  %166 = vperm.xlu1 %427, %v64_v11   ;;  %v400_v16 = vpack.c.bf16 %v63_v15, %v62_v14  ;;  %v66_v22 = vld [vmem:[%s588_s2] sm:$0x3]  ;;  %v404_v56 = vpack.c.bf16 %v220_v55, %v219_v54  ;;  %v222_v58 = vld [vmem:[#allocation4 + $0x18] sm:$0xff]  ;;  %v223_v59 = vld [vmem:[#allocation4 + $0x20] sm:$0xff] }
  0x2b   :  { %v80_v25 = vrot.slane %v66_v22, %v79_v21  ;;  %v176_v27 = vrot.slane %v66_v22, %v175_v24  ;;  %v326_v37 = vld [vmem:[%s590_s4] ss:$0 sm:$0xff]  ;;  %v224_v61 = vld [vmem:[#allocation4 + $0x28] sm:$0xff]  ;;  %v226_v0 = vld [vmem:[#allocation4 + $0x38] sm:$0xff] }
  0x2c   :  { %405 = vmatprep.subr.bf16.mxu1 %v404_v56  ;;  %v221_v57 = vld [vmem:[#allocation4 + $0x10] sm:$0xff]  ;;  %v412_v62 = vpack.c.bf16 %v224_v61, %v223_v59 }
  0x2d   :  { %395 = vmatpush3.bf16.msra.mxu0 %v392_v7  ;;  %74 = vperm.xlu0 %426, %v65_v13   ;;  %v408_v60 = vpack.c.bf16 %v222_v58, %v221_v57  ;;  %v225_v63 = vld [vmem:[#allocation4 + $0x30] sm:$0xff] }
  0x2e   :  { %397 = vmatprep.subr.bf16.mxu0 %v396_v12  ;;  %170 = vperm.xlu1 %427, %v65_v13   ;;  %v327_v14 = vld [vmem:[%s592_s6] ss:$0 sm:$0xff] }
  0x2f   :  { %407 = vmatpush3.bf16.msra.mxu1 %v404_v56 }
  0x30   :  { %409 = vmatprep.subr.bf16.mxu1 %v408_v60 }
  0x31   :  { %399 = vmatpush3.bf16.msra.mxu0 %v396_v12  ;;  %428 = vset.pattern.permute.xlu0 %v486_v1  ;;  %v416_v1 = vpack.c.bf16 %v226_v0, %v225_v63 }
  0x32   :  { %401 = vmatprep.subr.bf16.mxu0 %v400_v16 }
  0x33   :  { %411 = vmatpush3.bf16.msra.mxu1 %v408_v60 }
  0x34   :  { %413 = vmatprep.subr.bf16.mxu1 %v412_v62 }
  0x35   :  { %403 = vmatpush3.bf16.msra.mxu0 %v400_v16 }
  0x37   :  { %415 = vmatpush3.bf16.msra.mxu1 %v412_v62 }
  0x38   :  { %367 = vmatmul.mubr.msk.f32.vlgmr.msra.gmra.mrb[0].mxu0 %vm83_vm0, %v55_v17  ;;  %417 = vmatprep.subr.bf16.mxu1 %v416_v1 }
  0x3b   :  { %419 = vmatpush3.bf16.msra.mxu1 %v416_v1 }
  0xa8   :  { %v70_v20 = vpop.permute.xlu0 %69 }
  0xa9   :  { %v167_v23 = vpop.permute.xlu1 %166  ;;  %v81_v30 = vmul.f32 %v80_v25, %v70_v20 }
  0xaa   :  { %v177_v32 = vmul.f32 %v176_v27, %v167_v23 }
  0xac   :  { %v75_v26 = vpop.permute.xlu0 %74 }
  0xad   :  { %v171_v28 = vpop.permute.xlu1 %170  ;;  %v82_v29 = vmul.f32 %v80_v25, %v75_v26 }
  0xae   :  { %v178_v31 = vmul.f32 %v176_v27, %v171_v28 }
 0x10b   :  { %v368_v33 = vpop.f32.mrb[0].mxu0 }
 0x10c   :  { %v162_v34 = vadd.f32 %v368_v33, %v82_v29  ;;  %v156_v35 = vpop.f32.mrb[1].mxu0 }
 0x10d   :  { %v157_v36 = vadd.f32 %v156_v35, %v81_v30 }
 0x10e   :  { %v180_v38 = vadd.f32 %v178_v31, %v162_v34 }
 0x10f   :  { %v179_v39 = vadd.f32 %v177_v32, %v157_v36 }
 0x110   :  { %v189_v40 = vadd.f32 %v326_v37, %v180_v38 }
 0x111   :  { %v188_v41 = vadd.f32 %v326_v37, %v179_v39 }
 0x112   :  { %v193_v42 = vsel %vm83_vm0, %v189_v40, 0.0 }
 0x113   :  { %194 = vadd.xlane.f32.xlu1 %v193_v42  ;;  %v190_v43 = vsel %vm83_vm0, %v188_v41, 0.0 }
 0x114   :  { %191 = vadd.xlane.f32.xlu0 %v190_v43 }
 0x1a0   :  { %v195_v44 = vpop.xlane.xlu1 %194 }
 0x1a1   :  { %v198_v45 = vmul.f32 0.015625, %v195_v44  ;;  %v192_v46 = vpop.xlane.xlu0 %191 }
 0x1a2   :  { %v197_v47 = vmul.f32 0.015625, %v192_v46 }
 0x1a3   :  { %v200_v48 = vsub.f32 %v189_v40, %v198_v45 }
 0x1a4   :  { %v199_v49 = vsub.f32 %v188_v41, %v197_v47 }
 0x1a5   :  { %v202_v52 = vmul.f32 %v200_v48, %v200_v48 }
 0x1a6   :  { %v201_v50 = vmul.f32 %v199_v49, %v199_v49 }
 0x1a7   :  { %v206_v53 = vsel %vm83_vm0, %v202_v52, 0.0 }
 0x1a8   :  { %v203_v51 = vsel %vm83_vm0, %v201_v50, 0.0 }
 0x1a9   :  { %204 = vadd.xlane.f32.xlu0 %v203_v51 }
 0x1ad   :  { %207 = vadd.xlane.f32.xlu0 %v206_v53 }
 0x236   :  { %v205_v2 = vpop.xlane.xlu0 %204 }
 0x237   :  { %v209_v3 = vmul.f32 0.015625, %v205_v2 }
 0x239   :  { %v211_v4 = vadd.f32 1e-05, %v209_v3 }
 0x23a   :  { %v208_v5 = vpop.xlane.xlu0 %207 }
 0x23b   :  { %429 = vrsqrt.f32 %v211_v4  ;;  %v210_v6 = vmul.f32 0.015625, %v208_v5 }
 0x23d   :  { %v212_v7 = vadd.f32 1e-05, %v210_v6 }
 0x23f   :  { %431 = vrsqrt.f32 %v212_v7 }
 0x245   :  { %v430_v8 = vpop.eup %429 }
 0x246   :  { %v215_v9 = vmul.f32 %v430_v8, %v199_v49 }
 0x248   :  { %v217_v10 = vmax.f32 %v215_v9, 0.0 }
 0x249   :  { %v432_v11 = vpop.eup %431 }
 0x24a   :  { %385 = vmatprep.mubr.msk.f32.mxu1 %vm83_vm0, %v217_v10  ;;  %v216_v12 = vmul.f32 %v432_v11, %v200_v48 }
 0x24c   :  { %v218_v13 = vmax.f32 %v216_v12, 0.0 }
 0x24e   :  { %386 = vmatmul.mubr.msk.f32.vlgmr.msra.gmra.mrb[0].mxu1 %vm83_vm0, %v218_v13 }
 0x321   :  { %v387_v15 = vpop.f32.mrb[0].mxu1 }
 0x322   :  { %v312_v16 = vadd.f32 %v387_v15, %v327_v14  ;;  %v306_v17 = vpop.f32.mrb[1].mxu1 }
 0x323   :  { %v307_v18 = vadd.f32 %v327_v14, %v306_v17 }
 0x324   :  { %317 = vst.msk [vmem:[%s593_s7 + $0x8] sm:$0xff] %vm315_vm1, %v312_v16 }
 0x325   :  { %316 = vst.msk [vmem:[%s593_s7] sm:$0xff] %vm315_vm1, %v307_v18 }
 0x326   :  { %322 = vsyncpa [#allocation3], 1 }
 0x327   :  { %323 = vsyncpa [#allocation5], 1 }

</bundles_post_ra>
